<compile_context>
chip_gen: v5e
topology: v5e:2x2
jax: 0.10.0
libtpu: 0.0.40
codegen_flags: <defaults>
</compile_context>

<pallas_src>
import jax
import jax.numpy as jnp
import numpy as np
from jax.experimental import pallas as pl
from jax.experimental.pallas import tpu as pltpu


_VMEM = pl.BlockSpec(memory_space=pltpu.MemorySpace.VMEM)


# ---------------------------------------------------------------------------
# Kernel 1: hoisted input projection   (T*B, Din) @ (Din, 8H) + bias
# ---------------------------------------------------------------------------
def _proj_kernel(x_ref, w_ref, b_ref, o_ref):
    o_ref[...] = (jnp.dot(x_ref[...], w_ref[...],
                          preferred_element_type=jnp.float32)
                  + b_ref[...]).astype(o_ref.dtype)


def input_projection(x2d, wx, bias):
    """x2d: (M, Din), wx: (Din, 8H), bias: (1, 8H) -> (M, 8H) pre-activations."""
    M = x2d.shape[0]
    N = wx.shape[1]
    # TODO(synk): tile with a grid + BlockSpecs (and bf16 operands) once
    #             M / Din / 8H grow beyond whole-array-in-VMEM sizes.
    return pl.pallas_call(
        _proj_kernel,
        out_shape=jax.ShapeDtypeStruct((M, N), jnp.float32),
        in_specs=[_VMEM, _VMEM, _VMEM],
        out_specs=_VMEM,
    )(x2d, wx, bias)


# ---------------------------------------------------------------------------
# Fused bidirectional LSTM recurrence (shared by both recurrent kernels).
# ---------------------------------------------------------------------------
def _bidir_recurrence(pre_ref, whh, emit):
    """Fused fwd+rev LSTM recurrence.

    pre_ref : (T, B, 8H) ref of pre-activations (x @ W_ih + b), gate-major
              column layout [i_f, i_r, f_f, f_r, g_f, g_r, o_f, o_r] (H each).
    whh     : (2H, 8H) block-diagonal recurrent weights (rows = [h_fwd | h_rev]).
    emit    : optional callback emit(step, h) with h = (B, 2H) = [h_fwd | h_rev].
    Returns (h_after_last_step, h_after_step0).
    """
    T, B, H8 = pre_ref.shape
    H = H8 // 8
    col = jax.lax.broadcasted_iota(jnp.int32, (B, H8), 1)
    is_rev_col = ((col // H) % 2) == 1            # columns owned by reverse dir
    is_tanh_col = (col >= 4 * H) & (col < 6 * H)  # the "g" gate block

    h = jnp.zeros((B, 2 * H), jnp.float32)
    c = jnp.zeros((B, 2 * H), jnp.float32)
    h_step0 = h
    # TODO(synk): for long sequences switch to a time-chunked grid (or
    #             lax.fori_loop with pl.ds) instead of full unrolling.
    for s in range(T):
        # fwd consumes x[s]; rev consumes x[T-1-s]: lane-masked merge of the two
        # pre-activation rows (both already resident in VMEM, static indices).
        pre_s = jnp.where(is_rev_col, pre_ref[T - 1 - s], pre_ref[s])
        # Single MXU matmul per step for BOTH directions (block-diagonal whh).
        gates = pre_s + jnp.dot(h, whh, preferred_element_type=jnp.float32)
        # Full-width nonlinearity with a lane mask (no sub-128-lane slices).
        act = jnp.where(is_tanh_col, jnp.tanh(gates), jax.nn.sigmoid(gates))
        i_g = act[:, 0:2 * H]
        f_g = act[:, 2 * H:4 * H]
        g_g = act[:, 4 * H:6 * H]
        o_g = act[:, 6 * H:8 * H]
        c = f_g * c + i_g * g_g
        h = o_g * jnp.tanh(c)
        if s == 0:
            h_step0 = h
        if emit is not None:
            emit(s, h)
    return h, h_step0


def _bilstm_layer_kernel(pre_ref, whh_ref, out_ref):
    """One bidirectional layer; writes the full (T, B, 2H) hidden sequence."""
    T, _, H8 = pre_ref.shape
    H = H8 // 8

    def emit(s, h):
        # fwd hidden for time s, rev hidden for time T-1-s: written straight
        # into the two halves of the (T, B, 2H) output (no concat pass later).
        out_ref[s, :, 0:H] = h[:, 0:H]
        out_ref[T - 1 - s, :, H:2 * H] = h[:, H:2 * H]

    _bidir_recurrence(pre_ref, whh_ref[...], emit)


def _bilstm_last_kernel(pre_ref, whh_ref, fcw_ref, fcb_ref, out_ref):
    """Last bidirectional layer + fused Linear head.

    out[:, -1, :] == [fwd h after final step | rev h after its first step], so
    no (T, B, 2H) sequence writeback is needed and the reverse direction's
    useful work is a single step.
    """
    _, B, H8 = pre_ref.shape
    H = H8 // 8
    h_final, h_step0 = _bidir_recurrence(pre_ref, whh_ref[...], None)
    col = jax.lax.broadcasted_iota(jnp.int32, (B, 2 * H), 1)
    feat = jnp.where(col < H, h_final, h_step0)   # [h_fwd(T-1) | h_rev(T-1)]
    out_ref[...] = (jnp.dot(feat, fcw_ref[...],
                            preferred_element_type=jnp.float32)
                    + fcb_ref[...]).astype(out_ref.dtype)


def bilstm_layer(pre, whh):
    T, Bp, H8 = pre.shape
    H = H8 // 8
    return pl.pallas_call(
        _bilstm_layer_kernel,
        out_shape=jax.ShapeDtypeStruct((T, Bp, 2 * H), jnp.float32),
        in_specs=[_VMEM, _VMEM],
        out_specs=_VMEM,
    )(pre, whh)


def bilstm_last_layer(pre, whh, fc_wT, fc_b):
    _, Bp, _ = pre.shape
    C = fc_wT.shape[1]
    return pl.pallas_call(
        _bilstm_last_kernel,
        out_shape=jax.ShapeDtypeStruct((Bp, C), jnp.float32),
        in_specs=[_VMEM, _VMEM, _VMEM, _VMEM],
        out_specs=_VMEM,
    )(pre, whh, fc_wT, fc_b)


# ---------------------------------------------------------------------------
# Weight packing (trace-time, one-off XLA ops).
# ---------------------------------------------------------------------------
def _prep_layer_weights(p_fwd, p_rev, H):
    """Pack PyTorch per-direction LSTM weights into the fused layout.

    Column layout (8H wide, gate-major, direction-interleaved):
        [i_f, i_r, f_f, f_r, g_f, g_r, o_f, o_r]   (each block H wide)
    Returns wx (Din, 8H), whh (2H, 8H) block-diagonal, bias (1, 8H).
    """
    wx_cols, whh_cols, b_cols = [], [], []
    zeros_h = jnp.zeros((H, H), jnp.float32)
    for g in range(4):                         # PyTorch gate order: i, f, g, o
        rows = slice(g * H, (g + 1) * H)
        for d, p in enumerate((p_fwd, p_rev)):
            wx_cols.append(p["w_ih"][rows, :].T)               # (Din, H)
            b_cols.append(p["b_ih"][rows] + p["b_hh"][rows])   # (H,)
            blk = p["w_hh"][rows, :].T                         # (H, H)
            whh_cols.append(jnp.concatenate(
                [blk, zeros_h] if d == 0 else [zeros_h, blk], axis=0))
    wx = jnp.concatenate(wx_cols, axis=1)
    whh = jnp.concatenate(whh_cols, axis=1)
    bias = jnp.concatenate(b_cols).reshape(1, 8 * H)
    # TODO(synk): cast wx/whh (and pre-activations) to bfloat16 for the MXU when
    #             H/Din scale up; kept f32 here to match the f32 reference check.
    return wx, whh, bias


# ---------------------------------------------------------------------------
# Full BiLSTM forward (matches the PyTorch module's forward).
# ---------------------------------------------------------------------------
def bilstm_forward(x_btd, params, hidden_size, num_layers):
    """x (B, T, Din) batch-first -> logits (B, num_class)."""
    B, T, _ = x_btd.shape
    H = hidden_size
    Bp = max(8, ((B + 7) // 8) * 8)            # pad batch to full sublanes
    x = jnp.transpose(x_btd, (1, 0, 2))        # time-major (T, B, Din)
    if Bp != B:
        x = jnp.pad(x, ((0, 0), (0, Bp - B), (0, 0)))

    layer_in = x
    logits = None
    for layer in range(num_layers):
        p_f = params["lstm"][(layer, 0)]
        p_r = params["lstm"][(layer, 1)]
        wx, whh, bias = _prep_layer_weights(p_f, p_r, H)
        d_in = layer_in.shape[-1]
        pre = input_projection(layer_in.reshape(T * Bp, d_in), wx, bias)
        pre = pre.reshape(T, Bp, 8 * H)
        if layer < num_layers - 1:
            layer_in = bilstm_layer(pre, whh)                  # (T, Bp, 2H)
        else:
            logits = bilstm_last_layer(
                pre, whh, jnp.transpose(params["fc_w"]),
                params["fc_b"].reshape(1, -1))                 # (Bp, C)
    return logits[:B]


# ---------------------------------------------------------------------------
# Pure-JAX reference (for correctness checking only).
# ---------------------------------------------------------------------------
def _ref_forward(x_btd, params, hidden_size, num_layers):
    def cell(x_t, h, c, p):
        gates = (x_t @ p["w_ih"].T + h @ p["w_hh"].T + p["b_ih"] + p["b_hh"])
        i, f, g, o = jnp.split(gates, 4, axis=-1)
        c = jax.nn.sigmoid(f) * c + jax.nn.sigmoid(i) * jnp.tanh(g)
        h = jax.nn.sigmoid(o) * jnp.tanh(c)
        return h, c

    B, T, _ = x_btd.shape
    layer_in = x_btd
    for layer in range(num_layers):
        dir_outs = []
        for direction, order in enumerate((range(T), range(T - 1, -1, -1))):
            p = params["lstm"][(layer, direction)]
            h = jnp.zeros((B, hidden_size), jnp.float32)
            c = jnp.zeros((B, hidden_size), jnp.float32)
            hs = [None] * T
            for t in order:
                h, c = cell(layer_in[:, t, :], h, c, p)
                hs[t] = h
            dir_outs.append(jnp.stack(hs, axis=1))
        layer_in = jnp.concatenate(dir_outs, axis=-1)
    return layer_in[:, -1, :] @ params["fc_w"].T + params["fc_b"]


# ---------------------------------------------------------------------------
# Deterministic parameter init (PyTorch LSTM/Linear shapes, uniform(-k, k)).
# ---------------------------------------------------------------------------
def init_params(key, input_size, hidden_size, num_layers, num_class):
    H = hidden_size
    k = 1.0 / np.sqrt(H)
    params = {"lstm": {}}
    for layer in range(num_layers):
        d_in = input_size if layer == 0 else 2 * H
        for direction in range(2):
            key, k1, k2, k3, k4 = jax.random.split(key, 5)
            params["lstm"][(layer, direction)] = {
                "w_ih": jax.random.uniform(k1, (4 * H, d_in), jnp.float32, -k, k),
                "w_hh": jax.random.uniform(k2, (4 * H, H), jnp.float32, -k, k),
                "b_ih": jax.random.uniform(k3, (4 * H,), jnp.float32, -k, k),
                "b_hh": jax.random.uniform(k4, (4 * H,), jnp.float32, -k, k),
            }
    kf = 1.0 / np.sqrt(2 * H)
    key, k1, k2 = jax.random.split(key, 3)
    params["fc_w"] = jax.random.uniform(k1, (num_class, 2 * H), jnp.float32, -kf, kf)
    params["fc_b"] = jax.random.uniform(k2, (num_class,), jnp.float32, -kf, kf)
    return params


if __name__ == "__main__":
    # Small shapes consistent with the module's forward: x is (B, T, input_size).
    B, T = 2, 8
    input_size = 28
    hidden_size = 32
    num_layers = 2
    num_class = 10

    key = jax.random.PRNGKey(0)
    key, kx, kp = jax.random.split(key, 3)
    x = jax.random.normal(kx, (B, T, input_size), jnp.float32)
    params = init_params(kp, input_size, hidden_size, num_layers, num_class)

    out = bilstm_forward(x, params, hidden_size, num_layers)
    out = jax.block_until_ready(out)
    assert out.shape == (B, num_class), out.shape

    ref = _ref_forward(x, params, hidden_size, num_layers)
    np.testing.assert_allclose(np.asarray(out), np.asarray(ref),
                               rtol=5e-3, atol=5e-3)

    print("KERNEL_OK")
</pallas_src>

<mosaic_0001>
module attributes {stable_mosaic.version = 11 : i64} {
  func.func @_proj_kernel(%arg0: memref<64x28xf32, #tpu.memory_space<vmem>>, %arg1: memref<28x256xf32, #tpu.memory_space<vmem>>, %arg2: memref<1x256xf32, #tpu.memory_space<vmem>>, %arg3: memref<64x256xf32, #tpu.memory_space<vmem>>) attributes {dimension_semantics = [], scalar_prefetch = 0 : i64, scratch_operands = 0 : i64, tpu.core_type = #tpu.core_type<tc>} {
    %c0 = arith.constant 0 : index
    %c0_0 = arith.constant 0 : index
    %0 = vector.load %arg0[%c0, %c0_0] : memref<64x28xf32, #tpu.memory_space<vmem>>, vector<64x28xf32>
    %c0_1 = arith.constant 0 : index
    %c0_2 = arith.constant 0 : index
    %1 = vector.load %arg1[%c0_1, %c0_2] : memref<28x256xf32, #tpu.memory_space<vmem>>, vector<28x256xf32>
    %cst = arith.constant dense<0.000000e+00> : vector<64x256xf32>
    %2 = tpu.matmul %0, %1, %cst {dimension_numbers = #tpu.dot_dimension_numbers<[1], [0], [0], [1], [0, 0, 1, 1], [], []>} : vector<64x28xf32>, vector<28x256xf32>, vector<64x256xf32> -> vector<64x256xf32>
    %c0_3 = arith.constant 0 : index
    %c0_4 = arith.constant 0 : index
    %3 = vector.load %arg2[%c0_3, %c0_4] : memref<1x256xf32, #tpu.memory_space<vmem>>, vector<1x256xf32>
    %4 = vector.broadcast %3 : vector<1x256xf32> to vector<64x256xf32>
    %5 = arith.addf %2, %4 : vector<64x256xf32>
    %c0_5 = arith.constant 0 : index
    %c0_6 = arith.constant 0 : index
    %6 = vector.load %arg3[%c0_5, %c0_6] : memref<64x256xf32, #tpu.memory_space<vmem>>, vector<64x256xf32>
    tpu.vector_store %arg3[%c0_5, %c0_6], %5 {strides = array<i32>} : memref<64x256xf32, #tpu.memory_space<vmem>>, vector<64x256xf32>,
    return
  }
}

</mosaic_0001>

<bundles_post_ra>
// kernel: tpu_custom_call.1
= control target key start
LH: loop header
LB: loop body
LE: loop exit
PB: predicated region body
PF: predicated region fallthrough
CT: control target
= control target key end

     0   :  { %vm62_vm0 = vcmask 1043456   ;;  %vm37_vm1 = vcmask 228352   ;;  %s333_s0 = inlined_call_operand.vmem [shape: f32[64,28], index: 0, kind: input, shape index: {}]   ;;  %s334_s1 = inlined_call_operand.vmem [shape: f32[28,256], index: 1, kind: input, shape index: {}]   ;;  %s335_s2 = inlined_call_operand.vmem [shape: f32[1,256], index: 2, kind: input, shape index: {}]   ;;  %s336_s3 = inlined_call_operand.hbm [shape: f32[64,256], index: 3, kind: output, shape index: {}]  }
   0x1   :  { %v29_v0 = vld [vmem:[%s334_s1 + $0x30] sm:$0xf]  ;;  %v30_v1 = vld [vmem:[%s334_s1 + $0x38] sm:$0xf]  ;;  %v27_v2 = vld [vmem:[%s334_s1 + $0x20] sm:$0xff] }
   0x2   :  { %203 = vmatpush.msk.msra.mxu2 %vm62_vm0, %v29_v0  ;;  %207 = vmatpush.msk.msra.mxu3 %vm62_vm0, %v30_v1  ;;  %v28_v3 = vld [vmem:[%s334_s1 + $0x28] sm:$0xff]  ;;  %v25_v4 = vld [vmem:[%s334_s1 + $0x10] sm:$0xff]  ;;  %v26_v5 = vld [vmem:[%s334_s1 + $0x18] sm:$0xff] }
   0x3   :  { %185 = vmatpush.msk.msra.mxu0 %vm62_vm0, %v29_v0  ;;  %194 = vmatpush.msk.msra.mxu1 %vm62_vm0, %v30_v1  ;;  %v23_v6 = vld [vmem:[%s334_s1] sm:$0xff]  ;;  %v24_v7 = vld [vmem:[%s334_s1 + $0x8] sm:$0xff] }
   0x4   :  { %204 = vmatpush.msra.mxu2 %v27_v2  ;;  %208 = vmatpush.msra.mxu3 %v28_v3  ;;  %v19_v8 = vld [vmem:[%s333_s0 + $0x20] sm:$0xff] }
   0x5   :  { %82 = vmatpush.msra.mxu0 %v27_v2  ;;  %123 = vmatpush.msra.mxu1 %v28_v3 }
   0x6   :  { %205 = vmatpush.msra.mxu2 %v25_v4  ;;  %209 = vmatpush.msra.mxu3 %v26_v5 }
   0x7   :  { %8 = vsyncpa [#allocation3], 0  ;;  %83 = vmatpush.msra.mxu0 %v25_v4  ;;  %124 = vmatpush.msra.mxu1 %v26_v5  ;;  %v15_v9 = vld [vmem:[%s333_s0] sm:$0xff]  ;;  %v20_v10 = vld [vmem:[%s333_s0 + $0x28] sm:$0xff]  ;;  %s173_s20 = sshll.u32 %s336_s3, 4  ;;  %s241_s21 = smov 256   ;;  %s174_s20 = int_to_ptr.hbm [resolvable:$true] %s173_s20 }
   0x8   :  { %206 = vmatpush.msra.mxu2 %v23_v6  ;;  %210 = vmatpush.msra.mxu3 %v24_v7  ;;  %v16_v11 = vld [vmem:[%s333_s0 + $0x8] sm:$0xff]  ;;  %v21_v12 = vld [vmem:[%s333_s0 + $0x30] sm:$0xff]  ;;  %v22_v14 = vld [vmem:[%s333_s0 + $0x38] sm:$0xff]  ;;  %s242_s22 = smov 16  }
   0x9   :  { %190 = vmatmul.msk.f32.vlgmr.msra.gmra.mxu2 %vm37_vm1, %v19_v8  ;;  %199 = vmatmul.msk.f32.vlgmr.msra.gmra.mxu3 %vm37_vm1, %v19_v8  ;;  %v17_v13 = vld [vmem:[%s333_s0 + $0x10] sm:$0xff]  ;;  %v18_v15 = vld [vmem:[%s333_s0 + $0x18] sm:$0xff]  ;;  %v31_v16 = vld [vmem:[%s335_s2] sm:$0x3]  ;;  %s240_s0 = smov [#allocation2]  }
   0xa   :  { %84 = vmatpush.msra.mxu0 %v23_v6  ;;  %125 = vmatpush.msra.mxu1 %v24_v7  ;;  %v33_v17 = vperm.slane %v31_v16, 0  ;;  %v34_v18 = vperm.slane %v31_v16, 1  ;;  %s171_s2 = sshll.u32 %s240_s0, 4  ;;  %s172_s2 = int_to_ptr.vmem [resolvable:$true] %s171_s2 }
   0xb   :  { %186 = vmatmul.msk.f32.vlgmr.msra.gmra.mxu0 %vm37_vm1, %v15_v9  ;;  %195 = vmatmul.msk.f32.vlgmr.msra.gmra.mxu1 %vm37_vm1, %v15_v9 }
  0x11   :  { %191 = vmatmul.msk.f32.gmra.mxu2 %vm37_vm1, %v20_v10  ;;  %200 = vmatmul.msk.f32.gmra.mxu3 %vm37_vm1, %v20_v10 }
  0x13   :  { %187 = vmatmul.msk.f32.gmra.mxu0 %vm37_vm1, %v16_v11  ;;  %196 = vmatmul.msk.f32.gmra.mxu1 %vm37_vm1, %v16_v11 }
  0x19   :  { %192 = vmatmul.msk.f32.gmra.mxu2 %vm37_vm1, %v21_v12  ;;  %201 = vmatmul.msk.f32.gmra.mxu3 %vm37_vm1, %v21_v12 }
  0x1b   :  { %188 = vmatmul.msk.f32.gmra.mxu0 %vm37_vm1, %v17_v13  ;;  %197 = vmatmul.msk.f32.gmra.mxu1 %vm37_vm1, %v17_v13 }
  0x21   :  { %193 = vmatmul.msk.f32.gmra.mxu2 %vm37_vm1, %v22_v14  ;;  %202 = vmatmul.msk.f32.gmra.mxu3 %vm37_vm1, %v22_v14 }
  0x23   :  { %189 = vmatmul.msk.f32.gmra.mxu0 %vm37_vm1, %v18_v15  ;;  %198 = vmatmul.msk.f32.gmra.mxu1 %vm37_vm1, %v18_v15 }
  0x88   :  { %v86_v19 = vpop.f32.mrf.mxu0  ;;  %v127_v20 = vpop.f32.mrf.mxu1 }
  0x89   :  { %v87_v21 = vadd.f32 %v86_v19, %v33_v17  ;;  %v128_v22 = vadd.f32 %v127_v20, %v34_v18 }
  0x8b   :  { %151 = vst [vmem:[#allocation2] sm:$0xff] %v87_v21 }
  0x8c   :  { %v98_v23 = vpop.f32.mrf.mxu2  ;;  %152 = vst [vmem:[#allocation2 + $0x8] sm:$0xff] %v128_v22  ;;  %v139_v24 = vpop.f32.mrf.mxu3 }
  0x8d   :  { %v99_v25 = vadd.f32 %v98_v23, %v33_v17  ;;  %v140_v26 = vadd.f32 %v139_v24, %v34_v18 }
  0x8f   :  { %159 = vst [vmem:[#allocation2 + $0x40] sm:$0xff] %v99_v25 }
  0x90   :  { %160 = vst [vmem:[#allocation2 + $0x48] sm:$0xff] %v140_v26  ;;  %v89_v27 = vpop.f32.mrf.mxu0  ;;  %v130_v28 = vpop.f32.mrf.mxu1 }
  0x91   :  { %v90_v29 = vadd.f32 %v89_v27, %v33_v17  ;;  %v131_v30 = vadd.f32 %v130_v28, %v34_v18 }
  0x93   :  { %153 = vst [vmem:[#allocation2 + $0x10] sm:$0xff] %v90_v29 }
  0x94   :  { %v101_v31 = vpop.f32.mrf.mxu2  ;;  %154 = vst [vmem:[#allocation2 + $0x18] sm:$0xff] %v131_v30  ;;  %v142_v32 = vpop.f32.mrf.mxu3 }
  0x95   :  { %v102_v33 = vadd.f32 %v101_v31, %v33_v17  ;;  %v143_v34 = vadd.f32 %v142_v32, %v34_v18 }
  0x97   :  { %161 = vst [vmem:[#allocation2 + $0x50] sm:$0xff] %v102_v33 }
  0x98   :  { %162 = vst [vmem:[#allocation2 + $0x58] sm:$0xff] %v143_v34  ;;  %v92_v35 = vpop.f32.mrf.mxu0  ;;  %v133_v36 = vpop.f32.mrf.mxu1 }
  0x99   :  { %v93_v37 = vadd.f32 %v92_v35, %v33_v17  ;;  %v134_v38 = vadd.f32 %v133_v36, %v34_v18 }
  0x9b   :  { %155 = vst [vmem:[#allocation2 + $0x20] sm:$0xff] %v93_v37 }
  0x9c   :  { %v104_v39 = vpop.f32.mrf.mxu2  ;;  %156 = vst [vmem:[#allocation2 + $0x28] sm:$0xff] %v134_v38  ;;  %v145_v40 = vpop.f32.mrf.mxu3 }
  0x9d   :  { %v105_v41 = vadd.f32 %v104_v39, %v33_v17  ;;  %v146_v42 = vadd.f32 %v145_v40, %v34_v18 }
  0x9f   :  { %163 = vst [vmem:[#allocation2 + $0x60] sm:$0xff] %v105_v41 }
  0xa0   :  { %164 = vst [vmem:[#allocation2 + $0x68] sm:$0xff] %v146_v42  ;;  %v95_v43 = vpop.f32.mrf.mxu0  ;;  %v136_v44 = vpop.f32.mrf.mxu1 }
  0xa1   :  { %v96_v45 = vadd.f32 %v95_v43, %v33_v17  ;;  %v137_v46 = vadd.f32 %v136_v44, %v34_v18 }
  0xa3   :  { %157 = vst [vmem:[#allocation2 + $0x30] sm:$0xff] %v96_v45 }
  0xa4   :  { %v107_v47 = vpop.f32.mrf.mxu2  ;;  %158 = vst [vmem:[#allocation2 + $0x38] sm:$0xff] %v137_v46  ;;  %v148_v48 = vpop.f32.mrf.mxu3 }
  0xa5   :  { %v108_v49 = vadd.f32 %v107_v47, %v33_v17  ;;  %v149_v50 = vadd.f32 %v148_v48, %v34_v18 }
  0xa7   :  { %165 = vst [vmem:[#allocation2 + $0x70] sm:$0xff] %v108_v49 }
  0xa8   :  { %166 = vst [vmem:[#allocation2 + $0x78] sm:$0xff] %v149_v50 }
  0xa9   :  { %179 = dma.vmem_to_hbm [thread:$0]  %s172_s2, 2048, %s174_s20, [#allocation3], %s241_s21, %s241_s21, %s242_s22  }
  0xaa   :  { %238 = dma.done.wait [#allocation3], 2048  }
  0xab   :  { %239 = vsyncadd [#allocation3], 4294965248 }
  0xac   :  { %184 = vsyncpa [#allocation3], 1 }

</bundles_post_ra>
